<compile_context>
chip_gen: v5e
topology: v5e:2x2
jax: 0.10.0
libtpu: 0.0.40
codegen_flags: <defaults>
</compile_context>

<pallas_src>
import functools

import jax
import jax.numpy as jnp
from jax.experimental import pallas as pl
from jax.experimental.pallas import tpu as pltpu

LANE = 128        # lane width (last dim of every block)
TM_MAX = 4096     # max sublane rows per grid step -> 2 MiB f32 per input/step
NUM_CHUNKS = 2    # leading "parallel" grid axis (both TCs on v7x)


def _iou_kernel(p_ref, t_ref, inter_ref, total_ref, *,
                tm, rows, blocks_total, steps_per_chunk,
                need_row_mask, has_invalid_blocks):
    c = pl.program_id(0)             # chunk (parallel)
    s = pl.program_id(1)             # step within chunk (sequential reduction)
    gblk = c * steps_per_chunk + s   # global block index
    last_blk = blocks_total - 1

    @pl.when(s == 0)
    def _():
        inter_ref[...] = jnp.zeros_like(inter_ref)
        total_ref[...] = jnp.zeros_like(total_ref)

    def accumulate(mask_rows):
        p = p_ref[...].astype(jnp.float32)
        t = t_ref[...].astype(jnp.float32)
        if mask_rows:
            # Only the globally-last (ragged) block reaches here: rows past
            # `rows` hold undefined data and must not contribute.
            ridx = jax.lax.broadcasted_iota(jnp.int32, p.shape, 0) + gblk * tm
            valid = ridx < rows
            p = jnp.where(valid, p, 0.0)
            t = jnp.where(valid, t, 0.0)
        # VPU add-tree fold of the (tm, 128) block into one vreg (8, 128).
        inter_ref[...] += jnp.sum((p * t).reshape(tm // 8, 8, LANE), axis=0)
        total_ref[...] += jnp.sum((p + t).reshape(tm // 8, 8, LANE), axis=0)

    if need_row_mask:
        @pl.when(gblk < last_blk)
        def _():
            accumulate(False)

        @pl.when(gblk == last_blk)
        def _():
            accumulate(True)
    elif has_invalid_blocks:
        # Uneven chunk split: padding steps past the last block do nothing.
        @pl.when(gblk <= last_blk)
        def _():
            accumulate(False)
    else:
        accumulate(False)


@functools.partial(jax.jit, static_argnames=("smooth",))
def iou_loss(predictions, targets, smooth=1.0):
    """Pallas-TPU implementation of IoULoss.forward (returns a scalar f32)."""
    smooth = float(smooth)
    p = predictions.reshape(-1)
    t = targets.reshape(-1)
    n = p.shape[0]

    rows = n // LANE
    n_main = rows * LANE

    # Lane tail (< 128 elements): plain jnp on a tiny slice; no full-array pad.
    if n_main < n:
        p_tail = p[n_main:].astype(jnp.float32)
        t_tail = t[n_main:].astype(jnp.float32)
        inter_tail = jnp.sum(p_tail * t_tail)
        total_tail = jnp.sum(p_tail) + jnp.sum(t_tail)
    else:
        inter_tail = jnp.float32(0.0)
        total_tail = jnp.float32(0.0)

    if rows < 8:
        # Too small for a useful kernel launch (also guards empty inputs).
        pf = p.astype(jnp.float32)
        tf = t.astype(jnp.float32)
        inter = jnp.sum(pf * tf)
        total = jnp.sum(pf) + jnp.sum(tf)
        union = total - inter
        return (1.0 - (inter + smooth) / (union + smooth)).astype(jnp.float32)

    p2 = p[:n_main].reshape(rows, LANE)
    t2 = t[:n_main].reshape(rows, LANE)

    # Block rows: multiple of 8 (f32 sublane tile); ragged last block is
    # handled in-kernel with a mask emitted only for that block.
    tm = min(TM_MAX, (rows // 8) * 8)
    blocks_total = pl.cdiv(rows, tm)
    need_row_mask = (rows % tm) != 0

    nc = NUM_CHUNKS if blocks_total >= NUM_CHUNKS else 1
    steps = pl.cdiv(blocks_total, nc)
    has_invalid = (nc * steps) != blocks_total
    last_blk = blocks_total - 1

    if has_invalid:
        def in_map(c, s):
            # Clamp so the padding steps of an uneven split never generate an
            # out-of-bounds DMA; their accumulation is skipped in-kernel.
            return (jnp.minimum(c * steps + s, last_blk), 0)
    else:
        def in_map(c, s):
            return (c * steps + s, 0)

    inter_p, total_p = pl.pallas_call(
        functools.partial(
            _iou_kernel, tm=tm, rows=rows, blocks_total=blocks_total,
            steps_per_chunk=steps, need_row_mask=need_row_mask,
            has_invalid_blocks=has_invalid),
        out_shape=(
            jax.ShapeDtypeStruct((nc * 8, LANE), jnp.float32),
            jax.ShapeDtypeStruct((nc * 8, LANE), jnp.float32),
        ),
        grid_spec=pltpu.PrefetchScalarGridSpec(
            num_scalar_prefetch=0,
            grid=(nc, steps),
            in_specs=[
                pl.BlockSpec((tm, LANE), in_map),
                pl.BlockSpec((tm, LANE), in_map),
            ],
            out_specs=[
                pl.BlockSpec((8, LANE), lambda c, s: (c, 0)),
                pl.BlockSpec((8, LANE), lambda c, s: (c, 0)),
            ],
        ),
        compiler_params=pltpu.CompilerParams(
            dimension_semantics=("parallel", "arbitrary"),
            vmem_limit_bytes=32 * 1024 * 1024,
        ),
    )(p2, t2)

    inter = jnp.sum(inter_p) + inter_tail
    total = jnp.sum(total_p) + total_tail
    union = total - inter
    iou = (inter + smooth) / (union + smooth)
    return (1.0 - iou).astype(jnp.float32)


def iou_loss_ref(predictions, targets, smooth=1.0):
    p = predictions.reshape(-1).astype(jnp.float32)
    t = targets.reshape(-1).astype(jnp.float32)
    inter = jnp.sum(p * t)
    total = jnp.sum(p) + jnp.sum(t)
    union = total - inter
    return 1.0 - (inter + smooth) / (union + smooth)


if __name__ == "__main__":
    key = jax.random.PRNGKey(0)

    # Primary check: small NCHW segmentation-style inputs (lane-aligned path).
    kp, kt = jax.random.split(key)
    shape = (2, 4, 16, 16)
    predictions = jax.nn.sigmoid(jax.random.normal(kp, shape, dtype=jnp.float32))
    targets = (jax.random.uniform(kt, shape) > 0.5).astype(jnp.float32)

    loss = jax.block_until_ready(iou_loss(predictions, targets, smooth=1.0))
    ref = iou_loss_ref(predictions, targets, smooth=1.0)
    assert jnp.allclose(loss, ref, atol=1e-5, rtol=1e-5), (loss, ref)

    # Secondary check: odd shape exercising the lane tail, the ragged last
    # block mask, and the two-chunk grid split.
    kp2, kt2 = jax.random.split(kp)
    shape2 = (3, 5, 7, 11)
    p2 = jax.nn.sigmoid(jax.random.normal(kp2, shape2, dtype=jnp.float32))
    t2 = (jax.random.uniform(kt2, shape2) > 0.5).astype(jnp.float32)
    loss2 = jax.block_until_ready(iou_loss(p2, t2, smooth=1.0))
    ref2 = iou_loss_ref(p2, t2, smooth=1.0)
    assert jnp.allclose(loss2, ref2, atol=1e-5, rtol=1e-5), (loss2, ref2)

    print("KERNEL_OK")
</pallas_src>

<mosaic_0001>
module attributes {stable_mosaic.version = 11 : i64} {
  func.func @_iou_kernel(%arg0: i32, %arg1: i32, %arg2: memref<16x128xf32, #tpu.memory_space<vmem>>, %arg3: memref<16x128xf32, #tpu.memory_space<vmem>>, %arg4: memref<8x128xf32, #tpu.memory_space<vmem>>, %arg5: memref<8x128xf32, #tpu.memory_space<vmem>>) attributes {dimension_semantics = [#tpu.dimension_semantics<parallel>, #tpu.dimension_semantics<arbitrary>], iteration_bounds = array<i64: 1, 1>, scalar_prefetch = 0 : i64, scratch_operands = 0 : i64, tpu.core_type = #tpu.core_type<tc>, window_params = [{transform_indices = @transform_0, window_bounds = array<i64: 16, 128>}, {transform_indices = @transform_1, window_bounds = array<i64: 16, 128>}, {transform_indices = @transform_2, window_bounds = array<i64: 8, 128>}, {transform_indices = @transform_3, window_bounds = array<i64: 8, 128>}]} {
    %c0_i32 = arith.constant 0 : i32
    %0 = arith.cmpi eq, %arg1, %c0_i32 : i32
    %1 = arith.extui %0 : i1 to i32
    %c0_i32_0 = arith.constant 0 : i32
    %2 = arith.cmpi ne, %1, %c0_i32_0 : i32
    scf.if %2 {
      %cst_13 = arith.constant 0.000000e+00 : f32
      %17 = vector.broadcast %cst_13 : f32 to vector<8x128xf32>
      %c0_14 = arith.constant 0 : index
      %c0_15 = arith.constant 0 : index
      %18 = vector.load %arg4[%c0_14, %c0_15] : memref<8x128xf32, #tpu.memory_space<vmem>>, vector<8x128xf32>
      tpu.vector_store %arg4[%c0_14, %c0_15], %17 {strides = array<i32>} : memref<8x128xf32, #tpu.memory_space<vmem>>, vector<8x128xf32>,
      %cst_16 = arith.constant 0.000000e+00 : f32
      %19 = vector.broadcast %cst_16 : f32 to vector<8x128xf32>
      %c0_17 = arith.constant 0 : index
      %c0_18 = arith.constant 0 : index
      %20 = vector.load %arg5[%c0_17, %c0_18] : memref<8x128xf32, #tpu.memory_space<vmem>>, vector<8x128xf32>
      tpu.vector_store %arg5[%c0_17, %c0_18], %19 {strides = array<i32>} : memref<8x128xf32, #tpu.memory_space<vmem>>, vector<8x128xf32>,
    } else {
    }
    %c0 = arith.constant 0 : index
    %c0_1 = arith.constant 0 : index
    %3 = vector.load %arg2[%c0, %c0_1] : memref<16x128xf32, #tpu.memory_space<vmem>>, vector<16x128xf32>
    %c0_2 = arith.constant 0 : index
    %c0_3 = arith.constant 0 : index
    %4 = vector.load %arg3[%c0_2, %c0_3] : memref<16x128xf32, #tpu.memory_space<vmem>>, vector<16x128xf32>
    %c0_4 = arith.constant 0 : index
    %c0_5 = arith.constant 0 : index
    %5 = vector.load %arg4[%c0_4, %c0_5] : memref<8x128xf32, #tpu.memory_space<vmem>>, vector<8x128xf32>
    %6 = arith.mulf %3, %4 : vector<16x128xf32>
    %7 = vector.shape_cast %6 : vector<16x128xf32> to vector<2x8x128xf32>
    %cst = arith.constant dense<0.000000e+00> : vector<8x128xf32>
    %8 = vector.multi_reduction <add>, %7, %cst [0] : vector<2x8x128xf32> to vector<8x128xf32>
    %9 = arith.addf %5, %8 : vector<8x128xf32>
    %c0_6 = arith.constant 0 : index
    %c0_7 = arith.constant 0 : index
    %10 = vector.load %arg4[%c0_6, %c0_7] : memref<8x128xf32, #tpu.memory_space<vmem>>, vector<8x128xf32>
    tpu.vector_store %arg4[%c0_6, %c0_7], %9 {strides = array<i32>} : memref<8x128xf32, #tpu.memory_space<vmem>>, vector<8x128xf32>,
    %c0_8 = arith.constant 0 : index
    %c0_9 = arith.constant 0 : index
    %11 = vector.load %arg5[%c0_8, %c0_9] : memref<8x128xf32, #tpu.memory_space<vmem>>, vector<8x128xf32>
    %12 = arith.addf %3, %4 : vector<16x128xf32>
    %13 = vector.shape_cast %12 : vector<16x128xf32> to vector<2x8x128xf32>
    %cst_10 = arith.constant dense<0.000000e+00> : vector<8x128xf32>
    %14 = vector.multi_reduction <add>, %13, %cst_10 [0] : vector<2x8x128xf32> to vector<8x128xf32>
    %15 = arith.addf %11, %14 : vector<8x128xf32>
    %c0_11 = arith.constant 0 : index
    %c0_12 = arith.constant 0 : index
    %16 = vector.load %arg5[%c0_11, %c0_12] : memref<8x128xf32, #tpu.memory_space<vmem>>, vector<8x128xf32>
    tpu.vector_store %arg5[%c0_11, %c0_12], %15 {strides = array<i32>} : memref<8x128xf32, #tpu.memory_space<vmem>>, vector<8x128xf32>,
    return
  }
  func.func @transform_0(%arg0: i32, %arg1: i32) -> (i32, i32) {
    %c1_i32 = arith.constant 1 : i32
    %0 = arith.muli %arg0, %c1_i32 : i32
    %1 = arith.addi %0, %arg1 : i32
    %c0_i32 = arith.constant 0 : i32
    %c0_i32_0 = arith.constant 0 : i32
    return %1, %c0_i32 : i32, i32
  }
  func.func @transform_1(%arg0: i32, %arg1: i32) -> (i32, i32) {
    %c1_i32 = arith.constant 1 : i32
    %0 = arith.muli %arg0, %c1_i32 : i32
    %1 = arith.addi %0, %arg1 : i32
    %c0_i32 = arith.constant 0 : i32
    %c0_i32_0 = arith.constant 0 : i32
    return %1, %c0_i32 : i32, i32
  }
  func.func @transform_2(%arg0: i32, %arg1: i32) -> (i32, i32) {
    %c0_i32 = arith.constant 0 : i32
    %c0_i32_0 = arith.constant 0 : i32
    return %arg0, %c0_i32 : i32, i32
  }
  func.func @transform_3(%arg0: i32, %arg1: i32) -> (i32, i32) {
    %c0_i32 = arith.constant 0 : i32
    %c0_i32_0 = arith.constant 0 : i32
    return %arg0, %c0_i32 : i32, i32
  }
}

</mosaic_0001>

<bundles_post_ra>
// kernel: iou_loss.1
= control target key start
LH: loop header
LB: loop body
LE: loop exit
PB: predicated region body
PF: predicated region fallthrough
CT: control target
= control target key end

     0   :  { %s138_s0 = inlined_call_operand.vmem [shape: f32[16,128], index: 0, kind: input, shape index: {}]   ;;  %s139_s1 = inlined_call_operand.vmem [shape: f32[16,128], index: 1, kind: input, shape index: {}]   ;;  %s140_s2 = inlined_call_operand.vmem [shape: f32[8,128], index: 2, kind: output, shape index: {0}]   ;;  %s141_s3 = inlined_call_operand.vmem [shape: f32[8,128], index: 3, kind: output, shape index: {1}]  }
   0x1   :  { %v63_v0 = vld [vmem:[%s138_s0] sm:$0xff]  ;;  %v64_v1 = vld [vmem:[%s138_s0 + $0x8] sm:$0xff] }
   0x2   :  { %v65_v2 = vld [vmem:[%s139_s1] sm:$0xff]  ;;  %v66_v3 = vld [vmem:[%s139_s1 + $0x8] sm:$0xff] }
   0x3   :  { %v68_v4 = vmul.f32 %v65_v2, %v63_v0  ;;  %v74_v5 = vadd.f32 %v65_v2, %v63_v0  ;;  %v69_v6 = vmul.f32 %v66_v3, %v64_v1  ;;  %v75_v7 = vadd.f32 %v66_v3, %v64_v1 }
   0x5   :  { %v70_v8 = vadd.f32 %v69_v6, %v68_v4  ;;  %v76_v9 = vadd.f32 %v75_v7, %v74_v5 }
   0x7   :  { %72 = vst [vmem:[%s140_s2] sm:$0xff] %v70_v8 }
   0x8   :  { %78 = vst [vmem:[%s141_s3] sm:$0xff] %v76_v9 }

</bundles_post_ra>
